<compile_context>
chip_gen: v5e
topology: v5e:2x2
jax: 0.10.0
libtpu: 0.0.40
codegen_flags: <defaults>
</compile_context>

<pallas_src>
import math

import jax
import jax.numpy as jnp
from jax.experimental import pallas as pl
from jax.experimental.pallas import tpu as pltpu


def _layernorm(x, a, b, eps=1e-6):
    # Two-pass (mean, then centered sum of squares) for numerical robustness.
    # Matches torch: unbiased variance (N-1) and division by (std + eps).
    d = x.shape[-1]
    mean = jnp.mean(x, axis=-1, keepdims=True)
    xc = x - mean
    var = jnp.sum(xc * xc, axis=-1, keepdims=True) * (1.0 / (d - 1))
    return a * xc / (jnp.sqrt(var) + eps) + b


# ---------------------------------------------------------------------------
# pass 1: LayerNorm + fused QKV projection, head-major q/k/v written directly
# ---------------------------------------------------------------------------
def layernorm_qkv_kernel(x_ref, ln_a_ref, ln_b_ref, wqkv_ref, bqkv_ref,
                         q_ref, k_ref, v_ref):
    f32 = jnp.float32
    _, H, _, dk = q_ref.shape
    D = H * dk
    scale = 1.0 / math.sqrt(dk)

    x = x_ref[0].astype(f32)                                        # (ts, D)
    xn = _layernorm(x, ln_a_ref[0].astype(f32), ln_b_ref[0].astype(f32))
    qkv = jnp.dot(xn.astype(wqkv_ref.dtype), wqkv_ref[...],
                  preferred_element_type=f32) + bqkv_ref[0].astype(f32)   # (ts, 3D)

    # head-major relayout in VMEM (static lane slices); softmax scale folded into q
    for h in range(H):
        base = h * dk
        q_ref[0, h] = (qkv[:, base:base + dk] * scale).astype(q_ref.dtype)
        k_ref[0, h] = qkv[:, D + base:D + base + dk].astype(k_ref.dtype)
        v_ref[0, h] = qkv[:, 2 * D + base:2 * D + base + dk].astype(v_ref.dtype)


# ---------------------------------------------------------------------------
# pass 2: flash-style attention (online softmax over KV tiles) + Wo + FFN
# ---------------------------------------------------------------------------
def attn_ffn_kernel(mask_ref, x_ref, q_ref, k_ref, v_ref,
                    wo_ref, bo_ref, ln2a_ref, ln2b_ref,
                    w1_ref, b1_ref, w2_ref, b2_ref,
                    o_ref, m_ref, l_ref, acc_ref, ctx_ref):
    f32 = jnp.float32
    kv = pl.program_id(2)

    @pl.when(kv == 0)
    def _():
        m_ref[...] = jnp.full(m_ref.shape, -jnp.inf, f32)
        l_ref[...] = jnp.zeros(l_ref.shape, f32)
        acc_ref[...] = jnp.zeros(acc_ref.shape, f32)

    qh = q_ref[0]                                                   # (H, tq, dk) pre-scaled
    kh = k_ref[0]                                                   # (H, tkv, dk)
    vh = v_ref[0]                                                   # (H, tkv, dk)

    # one KV tile of scores for all heads (batched, head-leading contraction)
    s = jnp.einsum('hqd,hkd->hqk', qh, kh,
                   preferred_element_type=f32)                      # (H, tq, tkv)
    key_is_pad = mask_ref[0] == 0                                   # (1, tkv)
    s = jnp.where(key_is_pad[None], -1e9, s)                        # masked_fill semantics

    # online softmax update
    m_prev = m_ref[...]
    m_new = jnp.maximum(m_prev, jnp.max(s, axis=-1, keepdims=True))
    alpha = jnp.exp(m_prev - m_new)
    p = jnp.exp(s - m_new)
    l_ref[...] = alpha * l_ref[...] + jnp.sum(p, axis=-1, keepdims=True)
    acc_ref[...] = alpha * acc_ref[...] + jnp.einsum(
        'hqk,hkd->hqd', p.astype(vh.dtype), vh, preferred_element_type=f32)
    m_ref[...] = m_new

    @pl.when(kv == pl.num_programs(2) - 1)
    def _():
        H, tq, dk = acc_ref.shape
        ctx = acc_ref[...] * pl.reciprocal(l_ref[...], approx=True)     # (H, tq, dk) f32
        # pack per-head context into a lane-contiguous (tq, D) buffer, then a single
        # full-width output projection (no (H,tq,D) intermediate, full MXU contraction)
        for h in range(H):
            ctx_ref[:, h * dk:(h + 1) * dk] = ctx[h].astype(ctx_ref.dtype)
        attn = jnp.dot(ctx_ref[...], wo_ref[...],
                       preferred_element_type=f32) + bo_ref[0].astype(f32)

        x1 = x_ref[0].astype(f32) + attn                                 # residual 0
        xn2 = _layernorm(x1, ln2a_ref[0].astype(f32), ln2b_ref[0].astype(f32))
        hid = jnp.maximum(
            jnp.dot(xn2.astype(w1_ref.dtype), w1_ref[...],
                    preferred_element_type=f32) + b1_ref[0].astype(f32), 0.0)
        ff = jnp.dot(hid.astype(w2_ref.dtype), w2_ref[...],
                     preferred_element_type=f32) + b2_ref[0].astype(f32)
        o_ref[0] = (x1 + ff).astype(o_ref.dtype)                         # residual 1


# ---------------------------------------------------------------------------
# wrapper
# ---------------------------------------------------------------------------
def _round_up(n, m):
    return -(-n // m) * m


def _default_vmem_limit():
    # ~75% of physical VMEM, capped at 100 MiB (v5e/v6e: 128 MiB, v7x: 64 MiB/TC).
    try:
        cap = pltpu.get_tpu_info().vmem_capacity_bytes
        return int(min(100 * 1024 * 1024, cap * 3 // 4))
    except Exception:
        return 64 * 1024 * 1024


def _const_spec(shape, index_map):
    """BlockSpec for a constant-index (weight) block; single-buffered when supported."""
    try:
        return pl.BlockSpec(shape, index_map, pipeline_mode=pl.Buffered(1))
    except Exception:  # older jax without pipeline_mode -> default double buffering
        return pl.BlockSpec(shape, index_map)


def encoder_layer(x, mask, params, *, num_heads, q_tile=256, row_tile=1024,
                  qkv_dtype=jnp.bfloat16, vmem_limit_bytes=None):
    """x: (B,S,D) f32/bf16, mask: (B,1,S) int key-padding (1=keep, 0=mask)."""
    B, S, D = x.shape
    Dff = params["w1"].shape[1]
    H = num_heads
    assert D % H == 0 and mask.shape == (B, 1, S)
    assert q_tile % 128 == 0 and row_tile % 128 == 0
    dk = D // H
    if vmem_limit_bytes is None:
        vmem_limit_bytes = _default_vmem_limit()

    # ---- tile selection + sequence padding (no tiny-tile / full-S fallbacks) --------
    tq = min(q_tile, _round_up(S, 8))     # query/KV tile (mult. of 8; mult. of 128 if < S)
    Sp = _round_up(S, tq)                 # padded sequence length
    tkv = tq
    ts = tq                               # pass-1 sequence tile: largest multiple of tq
    cand = (min(row_tile, Sp) // tq) * tq
    while cand > tq:
        if Sp % cand == 0:
            ts = cand
            break
        cand -= tq

    xp, maskp = x, mask
    if Sp != S:                           # padded keys are masked out; padded query rows
        xp = jnp.pad(x, ((0, 0), (0, Sp - S), (0, 0)))                  # are sliced off
        maskp = jnp.pad(mask, ((0, 0), (0, 0), (0, Sp - S)))

    # ---- pass 1: LayerNorm + fused QKV, head-major bf16 q/k/v written directly ------
    c1 = lambda b, s: (0, 0)
    qkv_sds = jax.ShapeDtypeStruct((B, H, Sp, dk), qkv_dtype)
    hm_spec = pl.BlockSpec((1, H, ts, dk), lambda b, s: (b, 0, s, 0))
    q, k, v = pl.pallas_call(
        layernorm_qkv_kernel,
        out_shape=(qkv_sds, qkv_sds, qkv_sds),
        grid=(B, Sp // ts),
        in_specs=[
            pl.BlockSpec((1, ts, D), lambda b, s: (b, s, 0)),            # x tile
            _const_spec((1, D), c1), _const_spec((1, D), c1),            # ln1 gamma/beta
            _const_spec((D, 3 * D), c1),                                 # fused Wqkv
            _const_spec((1, 3 * D), c1),                                 # fused bqkv
        ],
        out_specs=(hm_spec, hm_spec, hm_spec),
        compiler_params=pltpu.CompilerParams(
            dimension_semantics=("parallel", "parallel"),
            vmem_limit_bytes=vmem_limit_bytes),
    )(xp, params["ln1_a"], params["ln1_b"], params["wqkv"], params["bqkv"])

    # ---- pass 2: flash attention + Wo + residual + LN2 + FFN + residual --------------
    c2 = lambda b, qi, kv: (0, 0)
    out = pl.pallas_call(
        attn_ffn_kernel,
        out_shape=jax.ShapeDtypeStruct((B, Sp, D), x.dtype),
        grid=(B, Sp // tq, Sp // tkv),
        in_specs=[
            pl.BlockSpec((1, 1, tkv), lambda b, qi, kv: (b, 0, kv)),          # mask
            pl.BlockSpec((1, tq, D), lambda b, qi, kv: (b, qi, 0)),           # x tile
            pl.BlockSpec((1, H, tq, dk), lambda b, qi, kv: (b, 0, qi, 0)),    # q tile
            pl.BlockSpec((1, H, tkv, dk), lambda b, qi, kv: (b, 0, kv, 0)),   # k tile
            pl.BlockSpec((1, H, tkv, dk), lambda b, qi, kv: (b, 0, kv, 0)),   # v tile
            _const_spec((D, D), c2), _const_spec((1, D), c2),                 # Wo, bo
            _const_spec((1, D), c2), _const_spec((1, D), c2),                 # ln2 gamma/beta
            _const_spec((D, Dff), c2), _const_spec((1, Dff), c2),             # W1, b1
            _const_spec((Dff, D), c2), _const_spec((1, D), c2),               # W2, b2
        ],
        out_specs=pl.BlockSpec((1, tq, D), lambda b, qi, kv: (b, qi, 0)),
        scratch_shapes=[
            pltpu.VMEM((H, tq, 1), jnp.float32),          # running max
            pltpu.VMEM((H, tq, 1), jnp.float32),          # running denom
            pltpu.VMEM((H, tq, dk), jnp.float32),         # running ctx accumulator
            pltpu.VMEM((tq, D), params["wo"].dtype),      # packed (tq, D) context
        ],
        compiler_params=pltpu.CompilerParams(
            dimension_semantics=("parallel", "parallel", "arbitrary"),
            vmem_limit_bytes=vmem_limit_bytes),
    )(maskp, xp, q, k, v,
      params["wo"], params["bo"], params["ln2_a"], params["ln2_b"],
      params["w1"], params["b1"], params["w2"], params["b2"])

    return out[:, :S] if Sp != S else out


# ---------------------------------------------------------------------------
# Pure-JAX reference (mirrors the PyTorch module) for verification
# ---------------------------------------------------------------------------
def encoder_layer_ref(x, mask, params, *, num_heads):
    B, S, D = x.shape
    dk = D // num_heads

    def ln(t, a, b, eps=1e-6):
        mean = jnp.mean(t, -1, keepdims=True)
        var = jnp.sum((t - mean) ** 2, -1, keepdims=True) / (D - 1)   # unbiased
        return a * (t - mean) / (jnp.sqrt(var) + eps) + b

    def one(xb, mb):                                      # xb (S,D), mb (1,S)
        xn = ln(xb, params["ln1_a"][0], params["ln1_b"][0])
        qkv = xn @ params["wqkv"] + params["bqkv"][0]
        q, k, v = qkv[:, :D], qkv[:, D:2 * D], qkv[:, 2 * D:]
        outs = []
        for h in range(num_heads):
            qs, ks, vs = (t[:, h * dk:(h + 1) * dk] for t in (q, k, v))
            sc = (qs @ ks.T) / math.sqrt(dk)
            sc = jnp.where(mb == 0, -1e9, sc)
            p = jax.nn.softmax(sc, axis=-1)
            outs.append(p @ vs)
        attn = jnp.concatenate(outs, -1) @ params["wo"] + params["bo"][0]
        x1 = xb + attn
        xn2 = ln(x1, params["ln2_a"][0], params["ln2_b"][0])
        ff = jnp.maximum(xn2 @ params["w1"] + params["b1"][0], 0.0) @ params["w2"] + params["b2"][0]
        return x1 + ff

    return jax.vmap(one)(x, mask)


if __name__ == "__main__":
    def make_params(key, D, DFF):
        ks = jax.random.split(key, 12)
        w = lambda k, shape: (0.02 * jax.random.normal(k, shape)).astype(jnp.float32)
        wq, wk, wv = w(ks[0], (D, D)), w(ks[1], (D, D)), w(ks[2], (D, D))
        bq, bk, bv = w(ks[3], (1, D)), w(ks[4], (1, D)), w(ks[5], (1, D))
        return dict(
            ln1_a=jnp.ones((1, D), jnp.float32), ln1_b=jnp.zeros((1, D), jnp.float32),
            ln2_a=jnp.ones((1, D), jnp.float32), ln2_b=jnp.zeros((1, D), jnp.float32),
            wqkv=jnp.concatenate([wq, wk, wv], axis=1),     # fused (D, 3D)
            bqkv=jnp.concatenate([bq, bk, bv], axis=1),     # fused (1, 3D)
            wo=w(ks[6], (D, D)), bo=w(ks[7], (1, D)),
            w1=w(ks[8], (D, DFF)), b1=w(ks[9], (1, DFF)),
            w2=w(ks[10], (DFF, D)), b2=w(ks[11], (1, D)),
        )

    B, S, D, H, DFF = 2, 8, 32, 4, 64
    key = jax.random.PRNGKey(0)
    kp, kx1, kx2 = jax.random.split(key, 3)
    params = make_params(kp, D, DFF)

    x = jax.random.normal(kx1, (B, S, D), jnp.float32)
    lens = jnp.array([S, 6])                                         # batch-1 is padded
    mask = (jnp.arange(S)[None, None, :] < lens[:, None, None]).astype(jnp.int32)
    ref = encoder_layer_ref(x, mask, params, num_heads=H)

    # (1) f32 q/k/v path — tight check against the PyTorch-equivalent reference
    out = jax.block_until_ready(
        encoder_layer(x, mask, params, num_heads=H, qkv_dtype=jnp.float32))
    assert out.shape == (B, S, D)
    assert jnp.allclose(out, ref, atol=2e-4, rtol=2e-4), "f32 path mismatch vs reference"

    # (2) default bf16 q/k/v path (halved HBM traffic / K,V VMEM residency)
    out_bf16 = jax.block_until_ready(encoder_layer(x, mask, params, num_heads=H))
    assert jnp.allclose(out_bf16, ref, atol=1e-2, rtol=1e-2), "bf16 path mismatch"

    # (3) sequence length that requires padding (exercises the padded-tile path)
    S2 = 12
    x2 = jax.random.normal(kx2, (B, S2, D), jnp.float32)
    lens2 = jnp.array([S2, 5])
    mask2 = (jnp.arange(S2)[None, None, :] < lens2[:, None, None]).astype(jnp.int32)
    out2 = jax.block_until_ready(encoder_layer(x2, mask2, params, num_heads=H))
    ref2 = encoder_layer_ref(x2, mask2, params, num_heads=H)
    assert out2.shape == (B, S2, D)
    assert jnp.allclose(out2, ref2, atol=1e-2, rtol=1e-2), "padded path mismatch"

    print("KERNEL_OK")
</pallas_src>

<mosaic_0001>
module attributes {stable_mosaic.version = 11 : i64} {
  func.func @layernorm_qkv_kernel(%arg0: i32, %arg1: i32, %arg2: memref<1x8x32xf32, #tpu.memory_space<vmem>>, %arg3: memref<1x32xf32, #tpu.memory_space<vmem>>, %arg4: memref<1x32xf32, #tpu.memory_space<vmem>>, %arg5: memref<32x96xf32, #tpu.memory_space<vmem>>, %arg6: memref<1x96xf32, #tpu.memory_space<vmem>>, %arg7: memref<1x4x8x8xf32, #tpu.memory_space<vmem>>, %arg8: memref<1x4x8x8xf32, #tpu.memory_space<vmem>>, %arg9: memref<1x4x8x8xf32, #tpu.memory_space<vmem>>) attributes {dimension_semantics = [#tpu.dimension_semantics<parallel>, #tpu.dimension_semantics<parallel>], iteration_bounds = array<i64: 2, 1>, scalar_prefetch = 0 : i64, scratch_operands = 0 : i64, tpu.core_type = #tpu.core_type<tc>, window_params = [{transform_indices = @transform_0, window_bounds = array<i64: 1, 8, 32>}, {pipeline_mode = #tpu.pipeline_mode<synchronous>, transform_indices = @transform_1, window_bounds = array<i64: 1, 32>}, {pipeline_mode = #tpu.pipeline_mode<synchronous>, transform_indices = @transform_2, window_bounds = array<i64: 1, 32>}, {pipeline_mode = #tpu.pipeline_mode<synchronous>, transform_indices = @transform_3, window_bounds = array<i64: 32, 96>}, {pipeline_mode = #tpu.pipeline_mode<synchronous>, transform_indices = @transform_4, window_bounds = array<i64: 1, 96>}, {transform_indices = @transform_5, window_bounds = array<i64: 1, 4, 8, 8>}, {transform_indices = @transform_6, window_bounds = array<i64: 1, 4, 8, 8>}, {transform_indices = @transform_7, window_bounds = array<i64: 1, 4, 8, 8>}]} {
    %c0 = arith.constant 0 : index
    %c0_0 = arith.constant 0 : index
    %c0_1 = arith.constant 0 : index
    %0 = vector.load %arg2[%c0, %c0_0, %c0_1] : memref<1x8x32xf32, #tpu.memory_space<vmem>>, vector<1x8x32xf32>
    %1 = vector.shape_cast %0 : vector<1x8x32xf32> to vector<8x32xf32>
    %c0_2 = arith.constant 0 : index
    %c0_3 = arith.constant 0 : index
    %2 = vector.load %arg3[%c0_2, %c0_3] : memref<1x32xf32, #tpu.memory_space<vmem>>, vector<1x32xf32>
    %3 = vector.shape_cast %2 : vector<1x32xf32> to vector<32xf32>
    %c0_4 = arith.constant 0 : index
    %c0_5 = arith.constant 0 : index
    %4 = vector.load %arg4[%c0_4, %c0_5] : memref<1x32xf32, #tpu.memory_space<vmem>>, vector<1x32xf32>
    %5 = vector.shape_cast %4 : vector<1x32xf32> to vector<32xf32>
    %cst = arith.constant dense<0.000000e+00> : vector<8xf32>
    %6 = vector.multi_reduction <add>, %1, %cst [1] : vector<8x32xf32> to vector<8xf32>
    %7 = vector.shape_cast %6 : vector<8xf32> to vector<8x1xf32>
    %cst_6 = arith.constant 3.200000e+01 : f32
    %8 = vector.broadcast %cst_6 : f32 to vector<8x1xf32>
    %9 = arith.divf %7, %8 : vector<8x1xf32>
    %10 = vector.broadcast %9 : vector<8x1xf32> to vector<8x32xf32>
    %11 = arith.subf %1, %10 : vector<8x32xf32>
    %12 = arith.mulf %11, %11 : vector<8x32xf32>
    %cst_7 = arith.constant dense<0.000000e+00> : vector<8xf32>
    %13 = vector.multi_reduction <add>, %12, %cst_7 [1] : vector<8x32xf32> to vector<8xf32>
    %14 = vector.shape_cast %13 : vector<8xf32> to vector<8x1xf32>
    %cst_8 = arith.constant 0.0322580636 : f32
    %15 = vector.broadcast %cst_8 : f32 to vector<8x1xf32>
    %16 = arith.mulf %14, %15 : vector<8x1xf32>
    %17 = vector.shape_cast %3 : vector<32xf32> to vector<1x32xf32>
    %18 = vector.broadcast %17 : vector<1x32xf32> to vector<8x32xf32>
    %19 = arith.mulf %18, %11 : vector<8x32xf32>
    %20 = math.sqrt %16 : vector<8x1xf32>
    %cst_9 = arith.constant 9.99999997E-7 : f32
    %21 = vector.broadcast %cst_9 : f32 to vector<8x1xf32>
    %22 = arith.addf %20, %21 : vector<8x1xf32>
    %23 = vector.broadcast %22 : vector<8x1xf32> to vector<8x32xf32>
    %24 = arith.divf %19, %23 : vector<8x32xf32>
    %25 = vector.shape_cast %5 : vector<32xf32> to vector<1x32xf32>
    %26 = vector.broadcast %25 : vector<1x32xf32> to vector<8x32xf32>
    %27 = arith.addf %24, %26 : vector<8x32xf32>
    %c0_10 = arith.constant 0 : index
    %c0_11 = arith.constant 0 : index
    %28 = vector.load %arg5[%c0_10, %c0_11] : memref<32x96xf32, #tpu.memory_space<vmem>>, vector<32x96xf32>
    %cst_12 = arith.constant dense<0.000000e+00> : vector<8x96xf32>
    %29 = tpu.matmul %27, %28, %cst_12 {dimension_numbers = #tpu.dot_dimension_numbers<[1], [0], [0], [1], [0, 0, 1, 1], [], []>} : vector<8x32xf32>, vector<32x96xf32>, vector<8x96xf32> -> vector<8x96xf32>
    %c0_13 = arith.constant 0 : index
    %c0_14 = arith.constant 0 : index
    %30 = vector.load %arg6[%c0_13, %c0_14] : memref<1x96xf32, #tpu.memory_space<vmem>>, vector<1x96xf32>
    %31 = vector.shape_cast %30 : vector<1x96xf32> to vector<96xf32>
    %32 = vector.shape_cast %31 : vector<96xf32> to vector<1x96xf32>
    %33 = vector.broadcast %32 : vector<1x96xf32> to vector<8x96xf32>
    %34 = arith.addf %29, %33 : vector<8x96xf32>
    %35 = vector.extract_strided_slice %34 {offsets = [0, 0], sizes = [8, 8], strides = [1, 1]} : vector<8x96xf32> to vector<8x8xf32>
    %cst_15 = arith.constant 0.353553385 : f32
    %36 = vector.broadcast %cst_15 : f32 to vector<8x8xf32>
    %37 = arith.mulf %35, %36 : vector<8x8xf32>
    %c0_16 = arith.constant 0 : index
    %c0_17 = arith.constant 0 : index
    %c0_18 = arith.constant 0 : index
    %c0_19 = arith.constant 0 : index
    %38 = vector.load %arg7[%c0_16, %c0_17, %c0_18, %c0_19] : memref<1x4x8x8xf32, #tpu.memory_space<vmem>>, vector<1x1x8x8xf32>
    %39 = vector.shape_cast %38 : vector<1x1x8x8xf32> to vector<8x8xf32>
    %40 = vector.shape_cast %37 : vector<8x8xf32> to vector<1x1x8x8xf32>
    tpu.vector_store %arg7[%c0_16, %c0_17, %c0_18, %c0_19], %40 {strides = array<i32>} : memref<1x4x8x8xf32, #tpu.memory_space<vmem>>, vector<1x1x8x8xf32>,
    %41 = vector.extract_strided_slice %34 {offsets = [0, 32], sizes = [8, 8], strides = [1, 1]} : vector<8x96xf32> to vector<8x8xf32>
    %c0_20 = arith.constant 0 : index
    %c0_21 = arith.constant 0 : index
    %c0_22 = arith.constant 0 : index
    %c0_23 = arith.constant 0 : index
    %42 = vector.load %arg8[%c0_20, %c0_21, %c0_22, %c0_23] : memref<1x4x8x8xf32, #tpu.memory_space<vmem>>, vector<1x1x8x8xf32>
    %43 = vector.shape_cast %42 : vector<1x1x8x8xf32> to vector<8x8xf32>
    %44 = vector.shape_cast %41 : vector<8x8xf32> to vector<1x1x8x8xf32>
    tpu.vector_store %arg8[%c0_20, %c0_21, %c0_22, %c0_23], %44 {strides = array<i32>} : memref<1x4x8x8xf32, #tpu.memory_space<vmem>>, vector<1x1x8x8xf32>,
    %45 = vector.extract_strided_slice %34 {offsets = [0, 64], sizes = [8, 8], strides = [1, 1]} : vector<8x96xf32> to vector<8x8xf32>
    %c0_24 = arith.constant 0 : index
    %c0_25 = arith.constant 0 : index
    %c0_26 = arith.constant 0 : index
    %c0_27 = arith.constant 0 : index
    %46 = vector.load %arg9[%c0_24, %c0_25, %c0_26, %c0_27] : memref<1x4x8x8xf32, #tpu.memory_space<vmem>>, vector<1x1x8x8xf32>
    %47 = vector.shape_cast %46 : vector<1x1x8x8xf32> to vector<8x8xf32>
    %48 = vector.shape_cast %45 : vector<8x8xf32> to vector<1x1x8x8xf32>
    tpu.vector_store %arg9[%c0_24, %c0_25, %c0_26, %c0_27], %48 {strides = array<i32>} : memref<1x4x8x8xf32, #tpu.memory_space<vmem>>, vector<1x1x8x8xf32>,
    %49 = vector.extract_strided_slice %34 {offsets = [0, 8], sizes = [8, 8], strides = [1, 1]} : vector<8x96xf32> to vector<8x8xf32>
    %cst_28 = arith.constant 0.353553385 : f32
    %50 = vector.broadcast %cst_28 : f32 to vector<8x8xf32>
    %51 = arith.mulf %49, %50 : vector<8x8xf32>
    %c0_29 = arith.constant 0 : index
    %c1 = arith.constant 1 : index
    %c0_30 = arith.constant 0 : index
    %c0_31 = arith.constant 0 : index
    %52 = vector.load %arg7[%c0_29, %c1, %c0_30, %c0_31] : memref<1x4x8x8xf32, #tpu.memory_space<vmem>>, vector<1x1x8x8xf32>
    %53 = vector.shape_cast %52 : vector<1x1x8x8xf32> to vector<8x8xf32>
    %54 = vector.shape_cast %51 : vector<8x8xf32> to vector<1x1x8x8xf32>
    tpu.vector_store %arg7[%c0_29, %c1, %c0_30, %c0_31], %54 {strides = array<i32>} : memref<1x4x8x8xf32, #tpu.memory_space<vmem>>, vector<1x1x8x8xf32>,
    %55 = vector.extract_strided_slice %34 {offsets = [0, 40], sizes = [8, 8], strides = [1, 1]} : vector<8x96xf32> to vector<8x8xf32>
    %c0_32 = arith.constant 0 : index
    %c1_33 = arith.constant 1 : index
    %c0_34 = arith.constant 0 : index
    %c0_35 = arith.constant 0 : index
    %56 = vector.load %arg8[%c0_32, %c1_33, %c0_34, %c0_35] : memref<1x4x8x8xf32, #tpu.memory_space<vmem>>, vector<1x1x8x8xf32>
    %57 = vector.shape_cast %56 : vector<1x1x8x8xf32> to vector<8x8xf32>
    %58 = vector.shape_cast %55 : vector<8x8xf32> to vector<1x1x8x8xf32>
    tpu.vector_store %arg8[%c0_32, %c1_33, %c0_34, %c0_35], %58 {strides = array<i32>} : memref<1x4x8x8xf32, #tpu.memory_space<vmem>>, vector<1x1x8x8xf32>,
    %59 = vector.extract_strided_slice %34 {offsets = [0, 72], sizes = [8, 8], strides = [1, 1]} : vector<8x96xf32> to vector<8x8xf32>
    %c0_36 = arith.constant 0 : index
    %c1_37 = arith.constant 1 : index
    %c0_38 = arith.constant 0 : index
    %c0_39 = arith.constant 0 : index
    %60 = vector.load %arg9[%c0_36, %c1_37, %c0_38, %c0_39] : memref<1x4x8x8xf32, #tpu.memory_space<vmem>>, vector<1x1x8x8xf32>
    %61 = vector.shape_cast %60 : vector<1x1x8x8xf32> to vector<8x8xf32>
    %62 = vector.shape_cast %59 : vector<8x8xf32> to vector<1x1x8x8xf32>
    tpu.vector_store %arg9[%c0_36, %c1_37, %c0_38, %c0_39], %62 {strides = array<i32>} : memref<1x4x8x8xf32, #tpu.memory_space<vmem>>, vector<1x1x8x8xf32>,
    %63 = vector.extract_strided_slice %34 {offsets = [0, 16], sizes = [8, 8], strides = [1, 1]} : vector<8x96xf32> to vector<8x8xf32>
    %cst_40 = arith.constant 0.353553385 : f32
    %64 = vector.broadcast %cst_40 : f32 to vector<8x8xf32>
    %65 = arith.mulf %63, %64 : vector<8x8xf32>
    %c0_41 = arith.constant 0 : index
    %c2 = arith.constant 2 : index
    %c0_42 = arith.constant 0 : index
    %c0_43 = arith.constant 0 : index
    %66 = vector.load %arg7[%c0_41, %c2, %c0_42, %c0_43] : memref<1x4x8x8xf32, #tpu.memory_space<vmem>>, vector<1x1x8x8xf32>
    %67 = vector.shape_cast %66 : vector<1x1x8x8xf32> to vector<8x8xf32>
    %68 = vector.shape_cast %65 : vector<8x8xf32> to vector<1x1x8x8xf32>
    tpu.vector_store %arg7[%c0_41, %c2, %c0_42, %c0_43], %68 {strides = array<i32>} : memref<1x4x8x8xf32, #tpu.memory_space<vmem>>, vector<1x1x8x8xf32>,
    %69 = vector.extract_strided_slice %34 {offsets = [0, 48], sizes = [8, 8], strides = [1, 1]} : vector<8x96xf32> to vector<8x8xf32>
    %c0_44 = arith.constant 0 : index
    %c2_45 = arith.constant 2 : index
    %c0_46 = arith.constant 0 : index
    %c0_47 = arith.constant 0 : index
    %70 = vector.load %arg8[%c0_44, %c2_45, %c0_46, %c0_47] : memref<1x4x8x8xf32, #tpu.memory_space<vmem>>, vector<1x1x8x8xf32>
    %71 = vector.shape_cast %70 : vector<1x1x8x8xf32> to vector<8x8xf32>
    %72 = vector.shape_cast %69 : vector<8x8xf32> to vector<1x1x8x8xf32>
    tpu.vector_store %arg8[%c0_44, %c2_45, %c0_46, %c0_47], %72 {strides = array<i32>} : memref<1x4x8x8xf32, #tpu.memory_space<vmem>>, vector<1x1x8x8xf32>,
    %73 = vector.extract_strided_slice %34 {offsets = [0, 80], sizes = [8, 8], strides = [1, 1]} : vector<8x96xf32> to vector<8x8xf32>
    %c0_48 = arith.constant 0 : index
    %c2_49 = arith.constant 2 : index
    %c0_50 = arith.constant 0 : index
    %c0_51 = arith.constant 0 : index
    %74 = vector.load %arg9[%c0_48, %c2_49, %c0_50, %c0_51] : memref<1x4x8x8xf32, #tpu.memory_space<vmem>>, vector<1x1x8x8xf32>
    %75 = vector.shape_cast %74 : vector<1x1x8x8xf32> to vector<8x8xf32>
    %76 = vector.shape_cast %73 : vector<8x8xf32> to vector<1x1x8x8xf32>
    tpu.vector_store %arg9[%c0_48, %c2_49, %c0_50, %c0_51], %76 {strides = array<i32>} : memref<1x4x8x8xf32, #tpu.memory_space<vmem>>, vector<1x1x8x8xf32>,
    %77 = vector.extract_strided_slice %34 {offsets = [0, 24], sizes = [8, 8], strides = [1, 1]} : vector<8x96xf32> to vector<8x8xf32>
    %cst_52 = arith.constant 0.353553385 : f32
    %78 = vector.broadcast %cst_52 : f32 to vector<8x8xf32>
    %79 = arith.mulf %77, %78 : vector<8x8xf32>
    %c0_53 = arith.constant 0 : index
    %c3 = arith.constant 3 : index
    %c0_54 = arith.constant 0 : index
    %c0_55 = arith.constant 0 : index
    %80 = vector.load %arg7[%c0_53, %c3, %c0_54, %c0_55] : memref<1x4x8x8xf32, #tpu.memory_space<vmem>>, vector<1x1x8x8xf32>
    %81 = vector.shape_cast %80 : vector<1x1x8x8xf32> to vector<8x8xf32>
    %82 = vector.shape_cast %79 : vector<8x8xf32> to vector<1x1x8x8xf32>
    tpu.vector_store %arg7[%c0_53, %c3, %c0_54, %c0_55], %82 {strides = array<i32>} : memref<1x4x8x8xf32, #tpu.memory_space<vmem>>, vector<1x1x8x8xf32>,
    %83 = vector.extract_strided_slice %34 {offsets = [0, 56], sizes = [8, 8], strides = [1, 1]} : vector<8x96xf32> to vector<8x8xf32>
    %c0_56 = arith.constant 0 : index
    %c3_57 = arith.constant 3 : index
    %c0_58 = arith.constant 0 : index
    %c0_59 = arith.constant 0 : index
    %84 = vector.load %arg8[%c0_56, %c3_57, %c0_58, %c0_59] : memref<1x4x8x8xf32, #tpu.memory_space<vmem>>, vector<1x1x8x8xf32>
    %85 = vector.shape_cast %84 : vector<1x1x8x8xf32> to vector<8x8xf32>
    %86 = vector.shape_cast %83 : vector<8x8xf32> to vector<1x1x8x8xf32>
    tpu.vector_store %arg8[%c0_56, %c3_57, %c0_58, %c0_59], %86 {strides = array<i32>} : memref<1x4x8x8xf32, #tpu.memory_space<vmem>>, vector<1x1x8x8xf32>,
    %87 = vector.extract_strided_slice %34 {offsets = [0, 88], sizes = [8, 8], strides = [1, 1]} : vector<8x96xf32> to vector<8x8xf32>
    %c0_60 = arith.constant 0 : index
    %c3_61 = arith.constant 3 : index
    %c0_62 = arith.constant 0 : index
    %c0_63 = arith.constant 0 : index
    %88 = vector.load %arg9[%c0_60, %c3_61, %c0_62, %c0_63] : memref<1x4x8x8xf32, #tpu.memory_space<vmem>>, vector<1x1x8x8xf32>
    %89 = vector.shape_cast %88 : vector<1x1x8x8xf32> to vector<8x8xf32>
    %90 = vector.shape_cast %87 : vector<8x8xf32> to vector<1x1x8x8xf32>
    tpu.vector_store %arg9[%c0_60, %c3_61, %c0_62, %c0_63], %90 {strides = array<i32>} : memref<1x4x8x8xf32, #tpu.memory_space<vmem>>, vector<1x1x8x8xf32>,
    return
  }
  func.func @transform_0(%arg0: i32, %arg1: i32) -> (i32, i32, i32) {
    %c0_i32 = arith.constant 0 : i32
    %c0_i32_0 = arith.constant 0 : i32
    return %arg0, %arg1, %c0_i32 : i32, i32, i32
  }
  func.func @transform_1(%arg0: i32, %arg1: i32) -> (i32, i32) {
    %c0_i32 = arith.constant 0 : i32
    %c0_i32_0 = arith.constant 0 : i32
    %c0_i32_1 = arith.constant 0 : i32
    return %c0_i32, %c0_i32_0 : i32, i32
  }
  func.func @transform_2(%arg0: i32, %arg1: i32) -> (i32, i32) {
    %c0_i32 = arith.constant 0 : i32
    %c0_i32_0 = arith.constant 0 : i32
    %c0_i32_1 = arith.constant 0 : i32
    return %c0_i32, %c0_i32_0 : i32, i32
  }
  func.func @transform_3(%arg0: i32, %arg1: i32) -> (i32, i32) {
    %c0_i32 = arith.constant 0 : i32
    %c0_i32_0 = arith.constant 0 : i32
    %c0_i32_1 = arith.constant 0 : i32
    return %c0_i32, %c0_i32_0 : i32, i32
  }
  func.func @transform_4(%arg0: i32, %arg1: i32) -> (i32, i32) {
    %c0_i32 = arith.constant 0 : i32
    %c0_i32_0 = arith.constant 0 : i32
    %c0_i32_1 = arith.constant 0 : i32
    return %c0_i32, %c0_i32_0 : i32, i32
  }
  func.func @transform_5(%arg0: i32, %arg1: i32) -> (i32, i32, i32, i32) {
    %c0_i32 = arith.constant 0 : i32
    %c0_i32_0 = arith.constant 0 : i32
    %c0_i32_1 = arith.constant 0 : i32
    return %arg0, %c0_i32, %arg1, %c0_i32_0 : i32, i32, i32, i32
  }
  func.func @transform_6(%arg0: i32, %arg1: i32) -> (i32, i32, i32, i32) {
    %c0_i32 = arith.constant 0 : i32
    %c0_i32_0 = arith.constant 0 : i32
    %c0_i32_1 = arith.constant 0 : i32
    return %arg0, %c0_i32, %arg1, %c0_i32_0 : i32, i32, i32, i32
  }
  func.func @transform_7(%arg0: i32, %arg1: i32) -> (i32, i32, i32, i32) {
    %c0_i32 = arith.constant 0 : i32
    %c0_i32_0 = arith.constant 0 : i32
    %c0_i32_1 = arith.constant 0 : i32
    return %arg0, %c0_i32, %arg1, %c0_i32_0 : i32, i32, i32, i32
  }
}

</mosaic_0001>

<bundles_post_ra>
// kernel: tpu_custom_call.1
= control target key start
LH: loop header
LB: loop body
LE: loop exit
PB: predicated region body
PF: predicated region fallthrough
CT: control target
= control target key end

     0   :  { %s1439_s0 = inlined_call_operand.hbm [shape: f32[2,8,32], index: 0, kind: input, shape index: {}]   ;;  %s1440_s1 = inlined_call_operand.hbm [shape: f32[1,32], index: 1, kind: input, shape index: {}]   ;;  %s1441_s2 = inlined_call_operand.vmem [shape: f32[1,32], index: 2, kind: input, shape index: {}]   ;;  %s1442_s3 = inlined_call_operand.hbm [shape: f32[32,96], index: 3, kind: input, shape index: {}]   ;;  %s1443_s4 = inlined_call_operand.vmem [shape: f32[1,96], index: 4, kind: input, shape index: {}]   ;;  %s1444_s5 = inlined_call_operand.hbm [shape: f32[2,4,8,8], index: 5, kind: output, shape index: {0}]   ;;  %s1445_s6 = inlined_call_operand.hbm [shape: f32[2,4,8,8], index: 6, kind: output, shape index: {1}]   ;;  %s1446_s7 = inlined_call_operand.hbm [shape: f32[2,4,8,8], index: 7, kind: output, shape index: {2}]  }
   0x1   :  { %1448 = sst [smem:[#allocation16_spill]] %s1439_s0 }
   0x2   :  { %1449 = sst [smem:[#allocation17_spill]] %s1440_s1 }
   0x3   :  { %1450 = sst [smem:[#allocation18_spill]] %s1441_s2 }
   0x4   :  { %1451 = sst [smem:[#allocation19_spill]] %s1442_s3 }
   0x5   :  { %13 = vsyncpa [#allocation3], 0 }
   0x6   :  { %15 = vsyncpa [#allocation3 + $0x1], 0 }
   0x7   :  { %16 = vsyncpa [#allocation6], 0 }
   0x8   :  { %17 = vsyncpa [#allocation4], 0 }
   0x9   :  { %19 = vsyncpa [#allocation4 + $0x1], 0 }
   0xa   :  { %20 = vsyncpa [#allocation10], 0 }
   0xb   :  { %22 = vsyncpa [#allocation10 + $0x1], 0  ;;  %s1198_s24 = smov 0   ;;  %s1200_s25 = smov 0  }
   0xc   :  { %s1202_s26 = smov 0   ;;  %s1204_s27 = smov 0  }
   0xd   :  { %s1206_s28 = smov 0   ;;  %s1208_s29 = smov 0  }
   0xe LB: > { %s1229_s30 = sadd.s32 4294967295, %s1138_s29   ;;  %s1447_s8 = sadd.s32 4294967294, %s1138_s29   ;;  %s1138_s29 = sphi %s1208_s29, %s28_s29   ;;  %s1134_s28 = sphi %s1206_s28, %s1465_s28   ;;  %s1130_s27 = sphi %s1204_s27, %s1464_s27   ;;  %s1126_s26 = sphi %s1202_s26, %s1463_s26   ;;  %s1122_s25 = sphi %s1200_s25, %s1462_s25   ;;  %s1118_s24 = sphi %s1198_s24, %s1461_s24  }
   0xf   : > { %p62_p0 = scmp.ne.s32.totalorder %s1122_s25, %s1118_s24  ;;  %p63_p1 = scmp.eq.s32.totalorder %s1229_s30, 0 }
  0x10   : > { %p178_p2 = scmp.eq.s32.totalorder %s1447_s8, 1  ;;  %p747_p4 = scmp.ge.s32.totalorder %s1138_s29, 1 }
  0x11   : > { %p1239_p3 = por %p63_p1, %p62_p0  ;;  %p241_p6 = scmp.lt.s32.totalorder %s1138_s29, 3 }
  0x12   : > { %p1244_p5 = por %p178_p2, %p62_p0  ;;  %s1454_s1 = sld [smem:[#allocation17_spill]] }
  0x13   : > { %p1252_p7 = pnand %p747_p4, %p241_p6  ;;  %p750_p8 = scmp.ge.s32.totalorder %s1138_s29, 2 }
  0x14   : > { %s1140_s15 = smov [#allocation5]   ;;  %s1456_s3 = sld [smem:[#allocation19_spill]] }
  0x15   : > { %p800_p9 = pneg %p1252_p7  ;;  %s255_s16 = sshll.u32 %s1140_s15, 4  ;;  %s256_s16 = int_to_ptr.vmem [resolvable:$true] %s255_s16 }
  0x16   : > { %s1141_s20 = smov [#allocation7]   ;;  %s1142_s22 = smov 128  }
  0x17   : > { %p801_p10 = pnand %p800_p9, %p63_p1  ;;  %s269_s21 = sshll.u32 %s1141_s20, 4  ;;  %s270_s21 = int_to_ptr.vmem [resolvable:$true] %s269_s21 }
  0x18   : > { %s253_s13 = sshll.u32 %s1454_s1, 4  ;;  %s1143_s23 = smov 8   ;;  %s254_s13 = int_to_ptr.hbm [resolvable:$true] %s253_s13 }
  0x19   : > { %803 = dma.hbm_to_vmem [thread:$0]  (!%p801_p10), %s254_s13, 16, %s256_s16, [#allocation6]  }
  0x1a   : > { %s267_s19 = sshll.u32 %s1456_s3, 4  ;;  %p172_p11 = scmp.eq.s32.totalorder %s1229_s30, 1  ;;  %s268_s19 = int_to_ptr.hbm [resolvable:$true] %s267_s19 }
  0x1b   : > { %806 = dma.hbm_to_vmem [thread:$0]  (!%p801_p10), %s268_s19, 512, %s270_s21, [#allocation6], %s1142_s22, %s1142_s22, %s1143_s23  }
  0x1c   : > { %s40_s11 = sadd.s32 1, %s1134_s28  ;;  %s49_s12 = sadd.s32 1, %s1126_s26 }
  0x1d   : > { %p42_p12 = scmp.ge.s32.totalorder %s40_s11, 2  ;;  %p56_p13 = scmp.ne.s32.totalorder %s1126_s26, %s1122_s25 }
  0x1e   : > { %p57_p0 = scmp.eq.s32.totalorder %s1138_s29, 0  ;;  %p823_p4 = scmp.lt.s32.totalorder %s1138_s29, 2 }
  0x1f   : > { %s1467_s11 = smov (%p42_p12, %s40_s11), 0  ;;  %p1272_p2 = por %p172_p11, %p56_p13 }
  0x20   : > { %s44_s13 = ssub.s32 %s1134_s28, %s1467_s11  ;;  %s286_s16 = sand.u32 1, %s1126_s26  }
  0x21   : > { %p47_p6 = scmp.eq.s32.totalorder %s44_s13, 0  ;;  %p58_p9 = por %p57_p0, %p56_p13 }
  0x22   : > { %s751_s17 = sshll.u32 %s286_s16, 3  ;;  %s752_s18 = sshll.u32 %s1134_s28, 3 }
  0x23   : > { %s1282_s19 = scalar_select %p47_p6, %s1126_s26, %s49_s12  }
  0x24   : > { %s1458_s0 = sld [smem:[#allocation16_spill]]  ;;  %s290_s8 = scalar_lea.vmem [#allocation2], %s751_s17 }
  0x25   : > { %s299_s1 = sshll.u32 %s290_s8, 4  ;;  %p808_p10 = pnand %p823_p4, %p58_p9  ;;  %s300_s1 = int_to_ptr.vmem [resolvable:$true] %s299_s1 }
  0x26   : > { %s287_s3 = scalar_lea.sflag [#allocation3], %s286_s16  ;;  %s1292_s12 = sand.u32 (!%p1252_p7), 1, %s1122_s25  }
  0x27   : > { %s754_s13 = sshll.u32 (!%p1252_p7), %s1292_s12, 3 }
  0x28   : > { %308 = sbr.rel (%p1252_p7) target bundleno = 622 (0x26e), region = 40  ;;  %s314_s20 = scalar_lea.vmem (!%p1252_p7), [#allocation2], %s754_s13 }
  0x2a   : > { %s295_s22 = scalar_lea.hbm %s1458_s0, %s752_s18  ;;  %s311_s18 = scalar_lea.sflag (!%p1252_p7), [#allocation3], %s1292_s12 }
  0x2b   : > { %s297_s23 = sshll.u32 %s295_s22, 4  ;;  %s298_s23 = int_to_ptr.hbm [resolvable:$true] %s297_s23 }
  0x2c   : > { %810 = dma.hbm_to_vmem [thread:$0]  (!%p808_p10), %s298_s23, 128, %s300_s1, %s287_s3  }
  0x2d   : > { %1101 = dma.done.wait (%p1239_p3), %s311_s18, 128  }
  0x2e   : > { %1103 = vsyncadd (%p1239_p3), %s311_s18, 4294967168 }
  0x2f   : > { %1105 = dma.done.wait (%p63_p1), [#allocation6], 528  }
  0x30   : > { %1107 = vsyncadd (%p63_p1), [#allocation6], 4294966768  ;;  %vm369_vm0 = vcmask 261120   ;;  %v366_v0 = vld [vmem:[%s314_s20] sm:$0xff]  ;;  %v1144_v2 = vmov 32.0   ;;  %v423_v17 = vld [vmem:[#allocation7] sm:$0xff] }
  0x31   : > { %v370_v1 = vsel %vm369_vm0, %v366_v0, 0.0  ;;  %896 = vrcp.f32 %v1144_v2  ;;  %v426_v14 = vld [vmem:[#allocation7 + $0x18] sm:$0xff]  ;;  %v425_v15 = vld [vmem:[#allocation7 + $0x10] sm:$0xff]  ;;  %v424_v16 = vld [vmem:[#allocation7 + $0x8] sm:$0xff]  ;;  %s1459_s2 = sld [smem:[#allocation18_spill]]  ;;  %s1314_s14 = sshll.u32 %s1292_s12, 5 }
  0x32   : > { %371 = vadd.xlane.f32.xlu0 %v370_v1  ;;  %446 = vmatpush.msra.mxu0 %v426_v14  ;;  %v893_v35 = vld [vmem:[#allocation5] ss:$0 sm:$0xff]  ;;  %v895_v46 = vld [vmem:[%s1443_s4] ss:$0 sm:$0xff]  ;;  %vm455_vm8 = vcmask 64512   ;;  %s1145_s16 = smov 64  }
  0x33   : > { %s1146_s17 = smov 80   ;;  %s1147_s21 = smov 96  }
  0x34   : > { %447 = vmatpush.msra.mxu0 %v425_v15  ;;  %s1317_s22 = scalar_lea.vmem [#allocation8], %s1314_s14  ;;  %s1148_s23 = smov 72  }
  0x35   : > { %s1149_s13 = smov 88   ;;  %s1150_s18 = smov 56  }
  0x36   : > { %448 = vmatpush.msra.mxu0 %v424_v16  ;;  %s1151_s20 = smov 120   ;;  %s1152_s1 = smov 48  }
  0x37   : > { %v897_v3 = vpop.eup %896  ;;  %v894_v42 = vld [vmem:[%s1459_s2] ss:$0 sm:$0xff]  ;;  %s1153_s3 = smov 112   ;;  %s1154_s8 = smov 40  }
  0x38   : > { %v374_v4 = vmul.f32 32.0, %v897_v3  ;;  %vm378_vm1 = vweird.f32 %v897_v3  ;;  %449 = vmatpush.msra.mxu0 %v423_v17  ;;  %s1155_s9 = smov 104  }
  0x3a   : > { %v375_v5 = vsub.f32 1.0, %v374_v4 }
  0x3c   : > { %v376_v6 = vmul.f32 %v897_v3, %v375_v5 }
  0x3e   : > { %v377_v7 = vadd.f32 %v897_v3, %v376_v6 }
  0x40   : > { %v379_v8 = vsel %vm378_vm1, %v897_v3, %v377_v7 }
  0xa5   : > { %v372_v9 = vpop.xlane.xlu0 %371 }
  0xa6   : > { %v380_v10 = vmul.f32 %v379_v8, %v372_v9 }
  0xa8   : > { %v381_v11 = vsub.f32 %v366_v0, %v380_v10 }
  0xaa   : > { %v382_v12 = vmul.f32 %v381_v11, %v381_v11  ;;  %v390_v40 = vmul.f32 %v893_v35, %v381_v11 }
  0xac   : > { %v383_v13 = vsel %vm369_vm0, %v382_v12, 0.0 }
  0xad   : > { %384 = vadd.xlane.f32.xlu0 %v383_v13 }
 0x120   : > { %v385_v18 = vpop.xlane.xlu0 %384 }
 0x121   : > { %v386_v19 = vmul.f32 0.032258064, %v385_v18 }
 0x123   : > { %898 = vrsqrt.f32 %v386_v19  ;;  %vm398_vm2 = vcmp.eq.f32.partialorder %v386_v19, inf  ;;  %v401_v27 = vand.u32 2147483648, %v386_v19  ;;  %vm400_vm3 = vcmp.eq.f32.partialorder %v386_v19, 0.0 }
 0x129   : > { %v899_v20 = vpop.eup %898 }
 0x12a   : > { %v392_v21 = vmul.f32 %v899_v20, %v386_v19 }
 0x12c   : > { %v393_v22 = vmul.f32 %v899_v20, %v392_v21 }
 0x12e   : > { %v394_v23 = vmul.f32 0.5, %v393_v22 }
 0x130   : > { %v395_v24 = vsub.f32 1.5, %v394_v23 }
 0x132   : > { %v396_v25 = vmul.f32 %v899_v20, %v395_v24 }
 0x134   : > { %v397_v26 = vmul.f32 %v396_v25, %v386_v19 }
 0x136   : > { %v399_v28 = vsel %vm398_vm2, %v386_v19, %v397_v26 }
 0x137   : > { %v402_v29 = vsel %vm400_vm3, %v401_v27, %v399_v28 }
 0x138   : > { %v403_v30 = vadd.f32 1e-06, %v402_v29 }
 0x13a   : > { %900 = vrcp.f32 %v403_v30  ;;  %v415_v34 = vand.u32 2147483648, %v403_v30  ;;  %v413_v37 = vand.u32 2147483647, %v403_v30  ;;  %vm409_vm5 = vweird.f32 %v403_v30 }
 0x13c   : > { %v416_v39 = vor.u32 1.1754944e-38, %v415_v34  ;;  %vm414_vm7 = vcmp.eq.f32.partialorder %v413_v37, 8.507059e+37 }
 0x140   : > { %v901_v31 = vpop.eup %900 }
 0x141   : > { %v405_v32 = vmul.f32 %v901_v31, %v403_v30  ;;  %vm410_vm4 = vweird.f32 %v901_v31 }
 0x142   : > { %vm411_vm6 = vmor %vm409_vm5, %vm410_vm4 }
 0x143   : > { %v406_v33 = vsub.f32 1.0, %v405_v32 }
 0x145   : > { %v407_v36 = vmul.f32 %v901_v31, %v406_v33 }
 0x147   : > { %v408_v38 = vadd.f32 %v901_v31, %v407_v36 }
 0x149   : > { %v412_v41 = vsel %vm411_vm6, %v901_v31, %v408_v38 }
 0x14a   : > { %v417_v43 = vsel %vm414_vm7, %v416_v39, %v412_v41 }
 0x14b   : > { %v418_v44 = vmul.f32 %v417_v43, %v390_v40 }
 0x14d   : > { %v422_v45 = vadd.f32 %v894_v42, %v418_v44 }
 0x14f   : > { %760 = vmatmul.msk.f32.vlgmr.msra.gmra.mxu0 %vm369_vm0, %v422_v45 }
 0x1cc   : > { %v451_v47 = vpop.f32.mrf.mxu0 }
 0x1cd   : > { %v452_v48 = vadd.f32 %v895_v46, %v451_v47 }
 0x1cf   : > { %462 = vrot.lane.b32.xlu0 %v452_v48, %s1145_s16  ;;  %487 = vrot.lane.b32.xlu2 %v452_v48, %s1146_s17  ;;  %v454_v49 = vmul.f32 0.35355338, %v452_v48  ;;  %s358_s16 = scalar_lea.vmem [#allocation9], %s1314_s14  ;;  %s365_s17 = scalar_lea.vmem [#allocation11], %s1314_s14 }
 0x1d0   : > { %458 = vrot.lane.b32.xlu1 %v452_v48, %s1147_s21  ;;  %s1327_s21 = sshll.u32 %s1130_s27, 5 }
 0x1d1   : > { %456 = vst.msk [vmem:[%s1317_s22] sm:$0xff] %vm455_vm8, %v454_v49  ;;  %s571_s27 = scalar_lea.hbm %s1446_s7, %s1327_s21 }
 0x1d2   : > { %s1345_s0 = sshll.u32 %s571_s27, 4  ;;  %s575_s0 = int_to_ptr.hbm [resolvable:$true] %s1345_s0 }
 0x1d7   : > { %502 = vrot.lane.b32.xlu2 %v452_v48, %s1148_s23  ;;  %s554_s23 = sshll.u32 %s358_s16, 4  ;;  %s1341_s23 = int_to_ptr.vmem [resolvable:$true] %s554_s23 }
 0x1d8   : > { %472 = vrot.lane.b32.xlu1 %v452_v48, %s1149_s13 }
 0x1df   : > { %477 = vrot.lane.b32.xlu2 %v452_v48, %s1150_s18 }
 0x1e0   : > { %467 = vrot.lane.b32.xlu1 %v454_v49, %s1151_s20  ;;  %s553_s20 = scalar_lea.hbm %s1445_s6, %s1327_s21 }
 0x1e7   : > { %492 = vrot.lane.b32.xlu2 %v452_v48, %s1152_s1  ;;  %s1012_s1 = scalar_lea.hbm %s1445_s6, 64 }
 0x1e8   : > { %482 = vrot.lane.b32.xlu1 %v454_v49, %s1153_s3  ;;  %s517_s3 = sand.u32 1, %s1229_s30  }
 0x1e9   : > { %s1353_s30 = scalar_lea.sflag [#allocation10], %s517_s3 }
 0x1ef   : > { %507 = vrot.lane.b32.xlu2 %v452_v48, %s1154_s8  ;;  %s1343_s8 = sshll.u32 %s553_s20, 4  ;;  %s557_s8 = int_to_ptr.hbm [resolvable:$true] %s1343_s8 }
 0x1f0   : > { %497 = vrot.lane.b32.xlu1 %v454_v49, %s1155_s9  ;;  %s572_s9 = sshll.u32 %s365_s17, 4  ;;  %s1006_s13 = sshra.s32 %s557_s8, 4  ;;  %s1348_s9 = int_to_ptr.vmem [resolvable:$true] %s572_s9  ;;  %s1007_s13 = int_to_ptr.hbm [resolvable:$true] %s1006_s13 }
 0x1f1   : > { %s1008_s18 = scalar_lea.hbm %s1007_s13, 32  ;;  %p1013_p11 = scmp.lt.s32.totalorder %s1007_s13, %s1445_s6 }
 0x1f2   : > { %p1009_p1 = scmp.ne.s32.totalorder %s1007_s13, %s1008_s18  ;;  %p1014_p12 = scmp.lt.s32.totalorder %s1012_s1, %s1008_s18 }
 0x1f4   : > { %p1010_p3 = pnand %p1009_p1, %p1272_p2  ;;  %p1015_p13 = por %p1014_p12, %p1013_p11 }
 0x1f6   : > { %p1011_p7 = pneg %p1010_p3 }
 0x1f8   : > { %p1016_p0 = pnand %p1015_p13, %p1011_p7 }
 0x229   : > { %v488_v50 = vpop.permute.xlu2 %487 }
 0x22a   : > { %765 = vst.msk [vmem:[%s358_s16 + $0x10] sm:$0xff] %vm455_vm8, %v488_v50 }
 0x231   : > { %v503_v51 = vpop.permute.xlu2 %502 }
 0x232   : > { %768 = vst.msk [vmem:[%s358_s16 + $0x18] sm:$0xff] %vm455_vm8, %v503_v51 }
 0x239   : > { %v478_v52 = vpop.permute.xlu2 %477 }
 0x23a   : > { %763 = vst.msk [vmem:[%s365_s17 + $0x8] sm:$0xff] %vm455_vm8, %v478_v52 }
 0x241   : > { %v463_v53 = vpop.permute.xlu0 %462  ;;  %v493_v54 = vpop.permute.xlu2 %492 }
 0x242   : > { %465 = vst.msk [vmem:[%s365_s17] sm:$0xff] %vm455_vm8, %v463_v53  ;;  %v459_v55 = vpop.permute.xlu1 %458 }
 0x243   : > { %766 = vst.msk [vmem:[%s365_s17 + $0x10] sm:$0xff] %vm455_vm8, %v493_v54 }
 0x244   : > { %461 = vst.msk [vmem:[%s358_s16] sm:$0xff] %vm455_vm8, %v459_v55 }
 0x249   : > { %v508_v56 = vpop.permute.xlu2 %507 }
 0x24a   : > { %769 = vst.msk [vmem:[%s365_s17 + $0x18] sm:$0xff] %vm455_vm8, %v508_v56  ;;  %v473_v57 = vpop.permute.xlu1 %472 }
 0x24b   : > { %762 = vst.msk [vmem:[%s358_s16 + $0x8] sm:$0xff] %vm455_vm8, %v473_v57 }
 0x24c   : > { %1019 = shalt.err (!%p1016_p0)
}
 0x24d   : > { %s1156_s16 = smov 128   ;;  %s1157_s17 = smov 8  }
 0x24e   : > { %795 = dma.vmem_to_hbm [thread:$0]  (%p1272_p2), %s1341_s23, 512, %s557_s8, %s1353_s30, %s1156_s16, %s1156_s16, %s1157_s17  }
 0x24f   : > { %s1034_s3 = sshra.s32 %s575_s0, 4  ;;  %s1040_s20 = scalar_lea.hbm %s1446_s7, 64  ;;  %s1035_s3 = int_to_ptr.hbm [resolvable:$true] %s1034_s3 }
 0x250   : > { %s1036_s2 = scalar_lea.hbm %s1035_s3, 32  ;;  %p1041_p10 = scmp.lt.s32.totalorder %s1035_s3, %s1446_s7 }
 0x251   : > { %p1037_p4 = scmp.ne.s32.totalorder %s1035_s3, %s1036_s2  ;;  %p1042_p1 = scmp.lt.s32.totalorder %s1040_s20, %s1036_s2 }
 0x253   : > { %p1038_p6 = pnand %p1037_p4, %p1272_p2  ;;  %p1043_p3 = por %p1042_p1, %p1041_p10 }
 0x255   : > { %p1039_p9 = pneg %p1038_p6 }
 0x257   : > { %p1044_p7 = pnand %p1043_p3, %p1039_p9 }
 0x259   : > { %1047 = shalt.err (!%p1044_p7)
}
 0x25a   : > { %796 = dma.vmem_to_hbm [thread:$0]  (%p1272_p2), %s1348_s9, 512, %s575_s0, %s1353_s30, %s1156_s16, %s1156_s16, %s1157_s17   ;;  %v468_v58 = vpop.permute.xlu1 %467 }
 0x25b   : > { %761 = vst.msk [vmem:[%s1317_s22 + $0x8] sm:$0xff] %vm455_vm8, %v468_v58  ;;  %s535_s27 = scalar_lea.hbm %s1444_s5, %s1327_s21  ;;  %s536_s3 = sshll.u32 %s1317_s22, 4  ;;  %s537_s3 = int_to_ptr.vmem [resolvable:$true] %s536_s3 }
 0x25c   : > { %s538_s2 = sshll.u32 %s535_s27, 4  ;;  %s513_s13 = scalar_lea.sflag [#allocation4], %s1292_s12  ;;  %s539_s2 = int_to_ptr.hbm [resolvable:$true] %s538_s2 }
 0x25d   : > { %s1062_s0 = sshra.s32 %s539_s2, 4  ;;  %s1068_s20 = scalar_lea.hbm %s1444_s5, 64  ;;  %s1063_s0 = int_to_ptr.hbm [resolvable:$true] %s1062_s0 }
 0x25e   : > { %s1064_s9 = scalar_lea.hbm %s1063_s0, 32  ;;  %p1069_p0 = scmp.lt.s32.totalorder %s1063_s0, %s1444_s5 }
 0x25f   : > { %p1065_p11 = scmp.ne.s32.totalorder %s1063_s0, %s1064_s9  ;;  %p1070_p4 = scmp.lt.s32.totalorder %s1068_s20, %s1064_s9 }
 0x261   : > { %p1066_p12 = pnand %p1065_p11, %p1272_p2  ;;  %p1071_p6 = por %p1070_p4, %p1069_p0 }
 0x262   : > { %v483_v59 = vpop.permute.xlu1 %482 }
 0x263   : > { %764 = vst.msk [vmem:[%s1317_s22 + $0x10] sm:$0xff] %vm455_vm8, %v483_v59  ;;  %p1067_p13 = pneg %p1066_p12 }
 0x265   : > { %p1072_p9 = pnand %p1071_p6, %p1067_p13 }
 0x26a   : > { %v498_v60 = vpop.permute.xlu1 %497 }
 0x26b   : > { %767 = vst.msk [vmem:[%s1317_s22 + $0x18] sm:$0xff] %vm455_vm8, %v498_v60 }
 0x26c   : > { %1075 = shalt.err (!%p1072_p9)
}
 0x26d   : > { %794 = dma.vmem_to_hbm [thread:$0]  (%p1272_p2), %s537_s3, 512, %s539_s2, %s513_s13, %s1156_s16, %s1156_s16, %s1157_s17  }
 0x26e PF: > { %s589_s12 = sand.u32 1, %s1118_s24   ;;  %p812_p10 = pnand %p750_p8, %p1244_p5 }
 0x26f   : > { %s590_s22 = scalar_lea.sflag [#allocation4], %s589_s12 }
 0x270   : > { %p813_p1 = pneg %p812_p10 }
 0x272   : > { %1109 = dma.done.wait (%p813_p1), %s590_s22, 512  }
 0x273   : > { %1111 = vsyncadd (%p813_p1), %s590_s22, 4294966784  ;;  %s1460_s1 = sadd.s32 4294967294, %s1138_s29  }
 0x274   : > { %s599_s23 = sand.u32 1, %s1460_s1  }
 0x275   : > { %s600_s15 = scalar_lea.sflag [#allocation10], %s599_s23 }
 0x276   : > { %1113 = dma.done.wait (%p813_p1), %s600_s15, 1024  }
 0x277   : > { %1115 = vsyncadd (%p813_p1), %s600_s15, 4294966272  ;;  %s28_s29 = sadd.s32 1, %s1138_s29   ;;  %s1461_s24 = smov %s1122_s25 }
 0x278   : > { %p25_p2 = scmp.ge.s32.totalorder %s28_s29, 4   ;;  %s1462_s25 = smov %s1126_s26 }
 0x279   : > { %s1463_s26 = smov %s1282_s19  ;;  %s1464_s27 = smov %s1134_s28 }
 0x27a   : > { %s1465_s28 = smov %s1467_s11  ;;  %27 = sbr.rel (!%p25_p2) target bundleno = 14 (0xe), region = 134 }
 0x27f   :  { %616 = vsyncpa [#allocation3], 1 }
 0x280   :  { %618 = vsyncpa [#allocation3 + $0x1], 1 }
 0x281   :  { %619 = vsyncpa [#allocation6], 1 }
 0x282   :  { %620 = vsyncpa [#allocation4], 1 }
 0x283   :  { %622 = vsyncpa [#allocation4 + $0x1], 1 }
 0x284   :  { %623 = vsyncpa [#allocation10], 1 }
 0x285   :  { %625 = vsyncpa [#allocation10 + $0x1], 1 }

</bundles_post_ra>
